<compile_context>
chip_gen: v5e
topology: v5e:2x2
jax: 0.10.0
libtpu: 0.0.40
codegen_flags: <defaults>
</compile_context>

<pallas_src>
import math

import jax
import jax.numpy as jnp
from jax.experimental import pallas as pl
from jax.experimental.pallas import tpu as pltpu

_LANE = 128
_SUBLANE = 8
_TARGET_BLOCK_ELEMS = 512 * 1024   # ~2 MiB of f32 per block
_MAX_ROW_TILE = 256


def _normalize_kernel(x_ref, mean_ref, inv_std_ref, o_ref):
    # x_ref:       (row_tile, lane_tile)
    # mean_ref:    (row_tile, 1)  f32
    # inv_std_ref: (row_tile, 1)  f32
    x = x_ref[...].astype(jnp.float32)
    out = (x - mean_ref[...]) * inv_std_ref[...]
    o_ref[...] = out.astype(o_ref.dtype)


def _pick_tile(extent: int, align: int, cap: int) -> int:
    """Largest tile <= cap that divides `extent` and is a multiple of `align`.

    Falls back to the full extent, which is always a legal block dim."""
    if extent <= cap:
        return extent
    if extent % align != 0:
        return extent
    t = (cap // align) * align
    while t >= align:
        if extent % t == 0:
            return t
        t -= align
    return extent


def _per_channel_column(p, B: int, C: int) -> jax.Array:
    """Broadcast mean/std (scalar, (1,), (C,), or (B, C)) to a (B*C, 1) column."""
    p = jnp.asarray(p, jnp.float32)
    if p.ndim == 0:
        p = p.reshape(1, 1)
    elif p.ndim == 1:
        p = p.reshape(1, -1)          # (1, 1) or (1, C)
    p = jnp.broadcast_to(p, (B, C))
    return p.reshape(B * C, 1)


def normalize_pallas(x: jax.Array, mean, std) -> jax.Array:
    """Normalize a (*, C, H, W) tensor with per-channel mean/std."""
    if x.ndim < 3:
        raise ValueError("input must have shape (*, C, H, W)")
    orig_shape = x.shape
    C, H, W = x.shape[-3:]
    B = int(math.prod(x.shape[:-3]))
    rows = B * C
    lanes = H * W

    mean_col = _per_channel_column(mean, B, C)
    inv_std_col = 1.0 / _per_channel_column(std, B, C)   # precompute 1/std once

    x2 = x.reshape(rows, lanes)       # lane-dense 2-D view (no data movement)

    row_tile = _pick_tile(rows, _SUBLANE, min(rows, _MAX_ROW_TILE))
    lane_cap = max(_LANE, _TARGET_BLOCK_ELEMS // max(row_tile, 1))
    lane_tile = _pick_tile(lanes, _LANE, lane_cap)
    grid = (rows // row_tile, lanes // lane_tile)

    itemsize = jnp.dtype(x.dtype).itemsize
    cost = pl.CostEstimate(
        flops=2 * rows * lanes,
        transcendentals=0,
        bytes_accessed=2 * rows * lanes * itemsize + 2 * rows * 4,
    )

    out2 = pl.pallas_call(
        _normalize_kernel,
        out_shape=jax.ShapeDtypeStruct((rows, lanes), x.dtype),
        grid=grid,
        in_specs=[
            pl.BlockSpec((row_tile, lane_tile), lambda i, j: (i, j)),
            pl.BlockSpec((row_tile, 1), lambda i, j: (i, 0)),
            pl.BlockSpec((row_tile, 1), lambda i, j: (i, 0)),
        ],
        out_specs=pl.BlockSpec((row_tile, lane_tile), lambda i, j: (i, j)),
        compiler_params=pltpu.CompilerParams(
            dimension_semantics=("parallel", "parallel")
        ),
        cost_estimate=cost,
    )(x2, mean_col, inv_std_col)

    return out2.reshape(orig_shape)


if __name__ == "__main__":
    key = jax.random.PRNGKey(0)
    B, C, H, W = 2, 4, 16, 16
    kx, km, ks = jax.random.split(key, 3)

    x = jax.random.normal(kx, (B, C, H, W), dtype=jnp.float32)
    # Deterministic per-channel parameters (as Normalize.__init__ would hold).
    mean = jax.random.normal(km, (C,), dtype=jnp.float32)
    std = jax.random.uniform(ks, (C,), dtype=jnp.float32, minval=0.5, maxval=2.0)

    out = normalize_pallas(x, mean, std)
    out = jax.block_until_ready(out)

    # Reference check (plain JAX, mirrors the PyTorch broadcasting semantics).
    ref = (x - mean[None, :, None, None]) / std[None, :, None, None]
    assert out.shape == x.shape and out.dtype == x.dtype
    assert jnp.allclose(out, ref, atol=1e-5, rtol=1e-5)

    print("KERNEL_OK")
</pallas_src>

<mosaic_0001>
module attributes {stable_mosaic.version = 11 : i64} {
  func.func @_normalize_kernel(%arg0: i32, %arg1: i32, %arg2: memref<8x256xf32, #tpu.memory_space<vmem>>, %arg3: memref<8x1xf32, #tpu.memory_space<vmem>>, %arg4: memref<8x1xf32, #tpu.memory_space<vmem>>, %arg5: memref<8x256xf32, #tpu.memory_space<vmem>>) attributes {dimension_semantics = [#tpu.dimension_semantics<parallel>, #tpu.dimension_semantics<parallel>], iteration_bounds = array<i64: 1, 1>, scalar_prefetch = 0 : i64, scratch_operands = 0 : i64, tpu.core_type = #tpu.core_type<tc>, window_params = [{transform_indices = @transform_0, window_bounds = array<i64: 8, 256>}, {transform_indices = @transform_1, window_bounds = array<i64: 8, 1>}, {transform_indices = @transform_2, window_bounds = array<i64: 8, 1>}, {transform_indices = @transform_3, window_bounds = array<i64: 8, 256>}]} {
    %c0 = arith.constant 0 : index
    %c0_0 = arith.constant 0 : index
    %0 = vector.load %arg2[%c0, %c0_0] : memref<8x256xf32, #tpu.memory_space<vmem>>, vector<8x256xf32>
    %c0_1 = arith.constant 0 : index
    %c0_2 = arith.constant 0 : index
    %1 = vector.load %arg3[%c0_1, %c0_2] : memref<8x1xf32, #tpu.memory_space<vmem>>, vector<8x1xf32>
    %2 = vector.broadcast %1 : vector<8x1xf32> to vector<8x256xf32>
    %3 = arith.subf %0, %2 : vector<8x256xf32>
    %c0_3 = arith.constant 0 : index
    %c0_4 = arith.constant 0 : index
    %4 = vector.load %arg4[%c0_3, %c0_4] : memref<8x1xf32, #tpu.memory_space<vmem>>, vector<8x1xf32>
    %5 = vector.broadcast %4 : vector<8x1xf32> to vector<8x256xf32>
    %6 = arith.mulf %3, %5 : vector<8x256xf32>
    %c0_5 = arith.constant 0 : index
    %c0_6 = arith.constant 0 : index
    %7 = vector.load %arg5[%c0_5, %c0_6] : memref<8x256xf32, #tpu.memory_space<vmem>>, vector<8x256xf32>
    tpu.vector_store %arg5[%c0_5, %c0_6], %6 {strides = array<i32>} : memref<8x256xf32, #tpu.memory_space<vmem>>, vector<8x256xf32>,
    return
  }
  func.func @transform_0(%arg0: i32, %arg1: i32) -> (i32, i32) {
    %c0_i32 = arith.constant 0 : i32
    return %arg0, %arg1 : i32, i32
  }
  func.func @transform_1(%arg0: i32, %arg1: i32) -> (i32, i32) {
    %c0_i32 = arith.constant 0 : i32
    %c0_i32_0 = arith.constant 0 : i32
    return %arg0, %c0_i32 : i32, i32
  }
  func.func @transform_2(%arg0: i32, %arg1: i32) -> (i32, i32) {
    %c0_i32 = arith.constant 0 : i32
    %c0_i32_0 = arith.constant 0 : i32
    return %arg0, %c0_i32 : i32, i32
  }
  func.func @transform_3(%arg0: i32, %arg1: i32) -> (i32, i32) {
    %c0_i32 = arith.constant 0 : i32
    return %arg0, %arg1 : i32, i32
  }
}

</mosaic_0001>

<bundles_post_ra>
// kernel: tpu_custom_call.1
= control target key start
LH: loop header
LB: loop body
LE: loop exit
PB: predicated region body
PF: predicated region fallthrough
CT: control target
= control target key end

     0   :  { %s117_s0 = inlined_call_operand.vmem [shape: f32[8,256], index: 0, kind: input, shape index: {}]   ;;  %s118_s1 = inlined_call_operand.vmem [shape: f32[8,1], index: 1, kind: input, shape index: {}]   ;;  %s119_s2 = inlined_call_operand.vmem [shape: f32[8,1], index: 2, kind: input, shape index: {}]   ;;  %s120_s3 = inlined_call_operand.hbm [shape: f32[8,256], index: 3, kind: output, shape index: {}]  }
   0x1   :  { %v17_v0 = vld [vmem:[%s118_s1] sm:$0xff] }
   0x2   :  { %8 = vsyncpa [#allocation3], 0  ;;  %v80_v1 = vmov 0   ;;  %v25_v2 = vld [vmem:[%s119_s2] sm:$0xff]  ;;  %v16_v5 = vld [vmem:[%s117_s0 + $0x8] sm:$0xff]  ;;  %s81_s1 = smov [#allocation2]  }
   0x3   :  { %53 = vset.pattern.permute.xlu0 %v80_v1  ;;  %v15_v4 = vld [vmem:[%s117_s0] sm:$0xff]  ;;  %s40_s20 = sshll.u32 %s81_s1, 4  ;;  %s42_s23 = sshll.u32 %s120_s3, 4  ;;  %s41_s20 = int_to_ptr.vmem [resolvable:$true] %s40_s20  ;;  %s43_s23 = int_to_ptr.hbm [resolvable:$true] %s42_s23 }
   0x4   :  { %20 = vperm.xlu0 %53, %v17_v0  }
   0xc   :  { %28 = vperm.xlu0 %53, %v25_v2  }
  0x76   :  { %v21_v3 = vpop.permute.xlu0 %20 }
  0x77   :  { %v23_v6 = vsub.f32 %v15_v4, %v21_v3  ;;  %v24_v7 = vsub.f32 %v16_v5, %v21_v3 }
  0x7e   :  { %v29_v8 = vpop.permute.xlu0 %28 }
  0x7f   :  { %v31_v9 = vmul.f32 %v29_v8, %v23_v6  ;;  %v32_v10 = vmul.f32 %v29_v8, %v24_v7 }
  0x81   :  { %33 = vst [vmem:[#allocation2] sm:$0xff] %v31_v9 }
  0x82   :  { %34 = vst [vmem:[#allocation2 + $0x8] sm:$0xff] %v32_v10 }
  0x83   :  { %45 = dma.vmem_to_hbm [thread:$0]  %s41_s20, 256, %s43_s23, [#allocation3]  }
  0x84   :  { %78 = dma.done.wait [#allocation3], 256  }
  0x85   :  { %79 = vsyncadd [#allocation3], 4294967040 }
  0x86   :  { %50 = vsyncpa [#allocation3], 1 }

</bundles_post_ra>
